<compile_context>
chip_gen: v5e
topology: v5e:2x2
jax: 0.10.0
libtpu: 0.0.40
codegen_flags: <defaults>
</compile_context>

<pallas_src>
import jax
import jax.numpy as jnp
from jax.experimental import pallas as pl
from jax.experimental.pallas import tpu as pltpu


# ------------------------------------------------------------------ small utils
def _ceil_div(a, b):
    return -(-a // b)


def _round_up(a, b):
    return _ceil_div(a, b) * b


def _num_tensorcores_per_chip():
    """2 only on v7x (two TensorCores per chip); 1 on v5e/v6e and any backend
    we cannot identify (n_groups=1 is always correct, just no megacore split)."""
    try:
        kind = jax.devices()[0].device_kind.lower()
    except Exception:
        return 1
    return 2 if ("v7" in kind or "7x" in kind) else 1


def _padded_tile_bytes(rows, arr):
    cols = _round_up(arr.shape[1], 128)        # lane padding (e.g. CE targets)
    return _round_up(rows, 8) * cols * arr.dtype.itemsize


def _pick_block_rows(n_rows, arrays, target_bytes=4 << 20):
    """Rows per tile: multiple of 32 (legal sublane tiling for f32/bf16/int8),
    sized so one step's (lane-padded) input tiles total about target_bytes.
    No artificial row cap: the byte target alone drives the tile size."""
    bytes_per_row = sum(_round_up(a.shape[1], 128) * a.dtype.itemsize
                        for a in arrays)
    cap = target_bytes // max(1, bytes_per_row)
    cap = max(32, (cap // 32) * 32)
    if n_rows <= cap:
        return n_rows          # single full-extent block (always legal)
    return cap


def _legalize_block_rows(block_rows, n_rows):
    """Explicit block_rows must still respect the minimum sublane tile."""
    if block_rows >= n_rows:
        return n_rows
    return max(32, (block_rows // 32) * 32)


def _lane_dense_2d(x, width=512):
    """Present an elementwise-loss input of any shape as a lane-dense
    (rows, width) slab (width % 128 == 0).  Returns (slab, n_valid_elems)."""
    if x.ndim >= 2 and x.shape[-1] % 128 == 0 and x.shape[-1] > 0:
        return x.reshape(-1, x.shape[-1]), x.size
    flat = x.reshape(-1)
    n = flat.size
    rows = _ceil_div(n, width)
    pad = rows * width - n
    if pad:
        flat = jnp.pad(flat, (0, pad))
    return flat.reshape(rows, width), n


# ---------------------------------------------------------------- core reduction
def _tiled_mean(per_tile_loss, arrays, *, denom, n_valid, loss_width,
                cost=None, block_rows=None):
    """sum(per_tile_loss over valid elements) / denom via a row-tiled grid.

    arrays: 2-D arrays sharing the leading row count.
    per_tile_loss(*tiles) -> f32 (block_rows, loss_width) per-element losses.
    n_valid: number of valid elements in the flattened (rows, loss_width) loss.
    """
    n_rows = arrays[0].shape[0]
    for a in arrays:
        assert a.ndim == 2 and a.shape[0] == n_rows

    if block_rows is None:
        block_rows = _pick_block_rows(n_rows, arrays)
    else:
        block_rows = _legalize_block_rows(block_rows, n_rows)

    num_tiles = _ceil_div(n_rows, block_rows)
    n_groups = _num_tensorcores_per_chip() if num_tiles >= 2 else 1

    # On a 2-TC split prefer an even tile count, so neither core has to
    # re-read and fully mask a clamped overhang tile.
    if n_groups == 2 and num_tiles % 2 == 1:
        cand = _round_up(_ceil_div(n_rows, num_tiles + 1), 32)
        if cand >= 32 and _ceil_div(n_rows, cand) % 2 == 0:
            block_rows = min(cand, n_rows)
            num_tiles = _ceil_div(n_rows, block_rows)

    tiles_per_group = _ceil_div(num_tiles, n_groups)
    has_overhang = (n_groups * tiles_per_group != num_tiles)

    if has_overhang:
        def in_index_map(g, t):
            # Clamp the (<=1) overhang tile back in range; its contribution
            # is masked to zero inside the kernel.
            return (jnp.minimum(g * tiles_per_group + t, num_tiles - 1), 0)
    else:
        def in_index_map(g, t):
            return (g * tiles_per_group + t, 0)

    use_vec_acc = (block_rows % 8 == 0)
    acc_shape = (8, loss_width) if use_vec_acc else (1, 1)
    covered = n_groups * tiles_per_group * block_rows * loss_width
    needs_mask = n_valid < covered

    n_in = len(arrays)

    def kernel(*refs):
        in_refs = refs[:n_in]
        o_ref = refs[n_in]
        acc_ref = refs[n_in + 1]
        g = pl.program_id(0)
        t = pl.program_id(1)

        @pl.when(t == 0)
        def _init():
            acc_ref[...] = jnp.zeros_like(acc_ref)

        loss = per_tile_loss(*[r[...] for r in in_refs])  # (block_rows, W) f32

        if needs_mask:
            row0 = (g * tiles_per_group + t) * block_rows
            rid = row0 + jax.lax.broadcasted_iota(jnp.int32, loss.shape, 0)
            if loss_width == 1:
                eid = rid
            else:
                eid = rid * loss_width + jax.lax.broadcasted_iota(
                    jnp.int32, loss.shape, 1)
            loss = jnp.where(eid < n_valid, loss, 0.0)

        if use_vec_acc:
            # Regroup rows into 8-sublane blocks: leading-axis sum is a chain
            # of elementwise VPU adds, no per-tile cross-lane (XLU) reduce.
            acc_ref[...] += loss.reshape(block_rows // 8, 8, loss_width).sum(axis=0)
        else:
            acc_ref[...] += jnp.sum(loss)

        @pl.when(t == pl.num_programs(1) - 1)
        def _finalize():
            o_ref[...] = acc_ref[...].reshape(o_ref.shape)

    # Explicit scoped-VMEM limit: double-buffered input tiles + headroom.
    # (v5e default is only 16 MiB; stays well under v7x's 64 MiB physical.)
    vmem_limit = int(min(
        max(2 * sum(_padded_tile_bytes(block_rows, a) for a in arrays) + (6 << 20),
            16 << 20),
        60 << 20))

    partials = pl.pallas_call(
        kernel,
        out_shape=jax.ShapeDtypeStruct((n_groups,) + acc_shape, jnp.float32),
        grid_spec=pltpu.PrefetchScalarGridSpec(
            num_scalar_prefetch=0,
            grid=(n_groups, tiles_per_group),
            in_specs=[pl.BlockSpec((block_rows, a.shape[1]), in_index_map)
                      for a in arrays],
            out_specs=pl.BlockSpec((1,) + acc_shape, lambda g, t: (g, 0, 0)),
            scratch_shapes=[pltpu.VMEM(acc_shape, jnp.float32)],
        ),
        compiler_params=pltpu.CompilerParams(
            dimension_semantics=("parallel", "arbitrary"),
            vmem_limit_bytes=vmem_limit,
        ),
        cost_estimate=cost,
    )(*arrays)

    # Tiny cross-group / cross-lane finish + mean in the wrapper (XLA).
    return jnp.sum(partials) / float(denom)


# ----------------------------------------------------------------- bpr (Softplus)
def _softplus_tile(x):
    x = x.astype(jnp.float32)
    # numerically stable softplus (torch.nn.Softplus, beta=1)
    # TODO(synk): on v7x the 2 transcendentals/element make the single EUP the
    # binding unit; a bf16 exp/log1p path (f32 accumulate) would ~double it.
    return jnp.maximum(x, 0.0) + jnp.log1p(jnp.exp(-jnp.abs(x)))


def bpr_loss(x, *, block_rows=None):
    slab, n_valid = _lane_dense_2d(x)
    cost = pl.CostEstimate(
        flops=5 * n_valid, transcendentals=2 * n_valid,
        bytes_accessed=int(slab.size * slab.dtype.itemsize))
    return _tiled_mean(_softplus_tile, [slab], denom=n_valid, n_valid=n_valid,
                       loss_width=slab.shape[1], cost=cost, block_rows=block_rows)


# -------------------------------------------------------- ce (CrossEntropyLoss)
def _ce_tile(z, t):
    z = z.astype(jnp.float32)                                     # (R, C)
    zmax = jnp.max(z, axis=-1, keepdims=True)
    shifted = z - zmax
    # TODO(synk): if a bundle dump shows the XLU saturating on v6e/v7x, offload
    # the two lane-axis sums below to the idle MXU via a ones-vector matmul.
    lse = jnp.log(jnp.sum(jnp.exp(shifted), axis=-1, keepdims=True))  # (R, 1)
    class_ids = jax.lax.broadcasted_iota(jnp.int32, z.shape, 1)
    # target pick: select-then-reduce (no one-hot float multiply)
    tgt = jnp.sum(jnp.where(class_ids == t, shifted, 0.0), axis=-1, keepdims=True)
    # TODO(synk): out-of-range target ids silently contribute `lse` instead of
    # raising like torch.nn.CrossEntropyLoss (no ignore_index support either).
    return lse - tgt                                              # (R, 1)


def ce_loss(logits, targets, *, block_rows=None):
    n, c = logits.shape
    # TODO(synk): the (n,1) int32 target block pads to 128 lanes in VMEM; it is
    # counted in the per-step byte budget, but could be passed via scalar
    # prefetch.  No column tiling yet, so one row tile must hold all C classes
    # (limits very large vocabularies on v7x's 64 MiB VMEM).
    t2 = targets.reshape(n, 1).astype(jnp.int32)
    cost = pl.CostEstimate(
        flops=5 * n * c, transcendentals=n * c + n,
        bytes_accessed=int(logits.size * logits.dtype.itemsize + t2.size * 4))
    return _tiled_mean(_ce_tile, [logits, t2], denom=n, n_valid=n,
                       loss_width=1, cost=cost, block_rows=block_rows)


# ------------------------------------------------- bce (BCEWithLogitsLoss)
def _bce_tile(x, y):
    x = x.astype(jnp.float32)
    y = y.astype(jnp.float32)
    # stable form of -[y*log(sigmoid(x)) + (1-y)*log(1-sigmoid(x))]
    return jnp.maximum(x, 0.0) - x * y + jnp.log1p(jnp.exp(-jnp.abs(x)))


def bce_loss(logits, targets, *, block_rows=None):
    assert logits.shape == targets.shape
    x_slab, n_valid = _lane_dense_2d(logits)
    y_slab, _ = _lane_dense_2d(targets)
    cost = pl.CostEstimate(
        flops=7 * n_valid, transcendentals=2 * n_valid,
        bytes_accessed=int(x_slab.size * x_slab.dtype.itemsize
                           + y_slab.size * y_slab.dtype.itemsize))
    return _tiled_mean(_bce_tile, [x_slab, y_slab], denom=n_valid,
                       n_valid=n_valid, loss_width=x_slab.shape[1],
                       cost=cost, block_rows=block_rows)


# --------------------------------------------------------------- module-like API
def loss_forward(loss_type, *x, block_rows=None):
    """Mirrors Loss(loss_type).forward(*x): returns a scalar mean loss."""
    if loss_type == "bpr":
        return bpr_loss(*x, block_rows=block_rows)
    elif loss_type == "ce":
        return ce_loss(*x, block_rows=block_rows)
    elif loss_type == "bce":
        return bce_loss(*x, block_rows=block_rows)
    else:
        raise ValueError(f"unknown loss_type {loss_type!r}")


if __name__ == "__main__":
    key = jax.random.PRNGKey(0)
    k1, k2, k3, k4, k5 = jax.random.split(key, 5)

    # Deliberately awkward small shapes: rows not a multiple of 32, width not a
    # multiple of 128, so the demo exercises lane-densify + tail masking +
    # partial tiles + (on v7x) the group split.
    N_ELEM, C_ELEM = 300, 127     # bpr / bce elementwise inputs
    N_CE, C_CE = 72, 128          # ce rows / classes
    BLOCK_ROWS = 32               # force a multi-tile grid in the demo

    # bpr: softplus over pairwise score differences
    x_bpr = jax.random.normal(k1, (N_ELEM, C_ELEM), dtype=jnp.float32)

    # ce: logits + integer class targets
    logits_ce = jax.random.normal(k2, (N_CE, C_CE), dtype=jnp.float32)
    targets_ce = jax.random.randint(k3, (N_CE,), 0, C_CE, dtype=jnp.int32)

    # bce: logits + {0,1} targets (bf16 -> half the HBM bytes for operand 2)
    logits_bce = jax.random.normal(k4, (N_ELEM, C_ELEM), dtype=jnp.float32)
    targets_bce = (jax.random.uniform(k5, (N_ELEM, C_ELEM)) > 0.5).astype(jnp.bfloat16)

    out_bpr = jax.block_until_ready(loss_forward("bpr", x_bpr, block_rows=BLOCK_ROWS))
    out_ce = jax.block_until_ready(
        loss_forward("ce", logits_ce, targets_ce, block_rows=BLOCK_ROWS))
    out_bce = jax.block_until_ready(
        loss_forward("bce", logits_bce, targets_bce, block_rows=BLOCK_ROWS))
    # also exercise the default (adaptive, full-extent single-tile) path
    out_bpr_def = jax.block_until_ready(loss_forward("bpr", x_bpr))

    # lightweight pure-JAX reference checks
    ref_bpr = jnp.mean(jax.nn.softplus(x_bpr))
    lsm = jax.nn.log_softmax(logits_ce, axis=-1)
    ref_ce = -jnp.mean(jnp.take_along_axis(lsm, targets_ce[:, None], axis=-1))
    y_f = targets_bce.astype(jnp.float32)
    ref_bce = jnp.mean(
        jnp.maximum(logits_bce, 0.0)
        - logits_bce * y_f
        + jnp.log1p(jnp.exp(-jnp.abs(logits_bce)))
    )

    assert jnp.allclose(out_bpr, ref_bpr, atol=2e-5, rtol=2e-5), (out_bpr, ref_bpr)
    assert jnp.allclose(out_bpr_def, ref_bpr, atol=2e-5, rtol=2e-5), (out_bpr_def, ref_bpr)
    assert jnp.allclose(out_ce, ref_ce, atol=2e-5, rtol=2e-5), (out_ce, ref_ce)
    assert jnp.allclose(out_bce, ref_bce, atol=2e-5, rtol=2e-5), (out_bce, ref_bce)

    print("KERNEL_OK")
</pallas_src>

<mosaic_0001>
module attributes {stable_mosaic.version = 11 : i64} {
  func.func @kernel(%arg0: i32, %arg1: i32, %arg2: memref<32x512xf32, #tpu.memory_space<vmem>>, %arg3: memref<1x8x512xf32, #tpu.memory_space<vmem>>, %arg4: memref<8x512xf32, #tpu.memory_space<vmem>>) attributes {dimension_semantics = [#tpu.dimension_semantics<parallel>, #tpu.dimension_semantics<arbitrary>], iteration_bounds = array<i64: 1, 3>, scalar_prefetch = 0 : i64, scratch_operands = 1 : i64, tpu.core_type = #tpu.core_type<tc>, window_params = [{transform_indices = @transform_0, window_bounds = array<i64: 32, 512>}, {transform_indices = @transform_1, window_bounds = array<i64: 1, 8, 512>}]} {
    %c0_i32 = arith.constant 0 : i32
    %0 = arith.cmpi eq, %arg1, %c0_i32 : i32
    %1 = arith.extui %0 : i1 to i32
    %c0_i32_0 = arith.constant 0 : i32
    %2 = arith.cmpi ne, %1, %c0_i32_0 : i32
    scf.if %2 {
      %cst_10 = arith.constant 0.000000e+00 : f32
      %34 = vector.broadcast %cst_10 : f32 to vector<8x512xf32>
      %c0_11 = arith.constant 0 : index
      %c0_12 = arith.constant 0 : index
      %35 = vector.load %arg4[%c0_11, %c0_12] : memref<8x512xf32, #tpu.memory_space<vmem>>, vector<8x512xf32>
      tpu.vector_store %arg4[%c0_11, %c0_12], %34 {strides = array<i32>} : memref<8x512xf32, #tpu.memory_space<vmem>>, vector<8x512xf32>,
    } else {
    }
    %c0 = arith.constant 0 : index
    %c0_1 = arith.constant 0 : index
    %3 = vector.load %arg2[%c0, %c0_1] : memref<32x512xf32, #tpu.memory_space<vmem>>, vector<32x512xf32>
    %cst = arith.constant 0.000000e+00 : f32
    %4 = vector.broadcast %cst : f32 to vector<32x512xf32>
    %5 = arith.maximumf %3, %4 : vector<32x512xf32>
    %6 = math.absf %3 : vector<32x512xf32>
    %cst_2 = arith.constant 0.000000e+00 : f32
    %7 = vector.broadcast %cst_2 : f32 to vector<32x512xf32>
    %8 = arith.subf %7, %6 : vector<32x512xf32>
    %9 = math.exp %8 : vector<32x512xf32>
    %10 = math.log1p %9 : vector<32x512xf32>
    %11 = arith.addf %5, %10 : vector<32x512xf32>
    %c3_i32 = arith.constant 3 : i32
    %12 = arith.muli %arg0, %c3_i32 : i32
    %13 = arith.addi %12, %arg1 : i32
    %c32_i32 = arith.constant 32 : i32
    %14 = arith.muli %13, %c32_i32 : i32
    %15 = tpu.iota {dimensions = array<i32: 0>} : vector<32x512xi32>
    %16 = vector.broadcast %14 : i32 to vector<32x512xi32>
    %17 = arith.addi %16, %15 : vector<32x512xi32>
    %c512_i32 = arith.constant 512 : i32
    %18 = vector.broadcast %c512_i32 : i32 to vector<32x512xi32>
    %19 = arith.muli %17, %18 : vector<32x512xi32>
    %20 = tpu.iota {dimensions = array<i32: 1>} : vector<32x512xi32>
    %21 = arith.addi %19, %20 : vector<32x512xi32>
    %c38100_i32 = arith.constant 38100 : i32
    %22 = vector.broadcast %c38100_i32 : i32 to vector<32x512xi32>
    %23 = arith.cmpi slt, %21, %22 : vector<32x512xi32>
    %cst_3 = arith.constant 0.000000e+00 : f32
    %24 = vector.broadcast %cst_3 : f32 to vector<32x512xf32>
    %25 = arith.select %23, %11, %24 : vector<32x512xi1>, vector<32x512xf32>
    %c0_4 = arith.constant 0 : index
    %c0_5 = arith.constant 0 : index
    %26 = vector.load %arg4[%c0_4, %c0_5] : memref<8x512xf32, #tpu.memory_space<vmem>>, vector<8x512xf32>
    %27 = vector.shape_cast %25 : vector<32x512xf32> to vector<4x8x512xf32>
    %cst_6 = arith.constant dense<0.000000e+00> : vector<8x512xf32>
    %28 = vector.multi_reduction <add>, %27, %cst_6 [0] : vector<4x8x512xf32> to vector<8x512xf32>
    %29 = arith.addf %26, %28 : vector<8x512xf32>
    %c0_7 = arith.constant 0 : index
    %c0_8 = arith.constant 0 : index
    %30 = vector.load %arg4[%c0_7, %c0_8] : memref<8x512xf32, #tpu.memory_space<vmem>>, vector<8x512xf32>
    tpu.vector_store %arg4[%c0_7, %c0_8], %29 {strides = array<i32>} : memref<8x512xf32, #tpu.memory_space<vmem>>, vector<8x512xf32>,
    %c2_i32 = arith.constant 2 : i32
    %31 = arith.cmpi eq, %arg1, %c2_i32 : i32
    %32 = arith.extui %31 : i1 to i32
    %c0_i32_9 = arith.constant 0 : i32
    %33 = arith.cmpi ne, %32, %c0_i32_9 : i32
    scf.if %33 {
      %c0_10 = arith.constant 0 : index
      %c0_11 = arith.constant 0 : index
      %34 = vector.load %arg4[%c0_10, %c0_11] : memref<8x512xf32, #tpu.memory_space<vmem>>, vector<8x512xf32>
      %35 = vector.shape_cast %34 : vector<8x512xf32> to vector<1x8x512xf32>
      %c0_12 = arith.constant 0 : index
      %c0_13 = arith.constant 0 : index
      %c0_14 = arith.constant 0 : index
      %36 = vector.load %arg3[%c0_12, %c0_13, %c0_14] : memref<1x8x512xf32, #tpu.memory_space<vmem>>, vector<1x8x512xf32>
      tpu.vector_store %arg3[%c0_12, %c0_13, %c0_14], %35 {strides = array<i32>} : memref<1x8x512xf32, #tpu.memory_space<vmem>>, vector<1x8x512xf32>,
    } else {
    }
    return
  }
  func.func @transform_0(%arg0: i32, %arg1: i32) -> (i32, i32) {
    %c3_i32 = arith.constant 3 : i32
    %0 = arith.muli %arg0, %c3_i32 : i32
    %1 = arith.addi %0, %arg1 : i32
    %c0_i32 = arith.constant 0 : i32
    %c0_i32_0 = arith.constant 0 : i32
    return %1, %c0_i32 : i32, i32
  }
  func.func @transform_1(%arg0: i32, %arg1: i32) -> (i32, i32, i32) {
    %c0_i32 = arith.constant 0 : i32
    %c0_i32_0 = arith.constant 0 : i32
    %c0_i32_1 = arith.constant 0 : i32
    return %arg0, %c0_i32, %c0_i32_0 : i32, i32, i32
  }
}

</mosaic_0001>

<bundles_post_ra>
// kernel: tpu_custom_call.1
= control target key start
LH: loop header
LB: loop body
LE: loop exit
PB: predicated region body
PF: predicated region fallthrough
CT: control target
= control target key end

     0   :  { %6 = vsyncpa [#allocation4], 0  ;;  %s1442_s0 = inlined_call_operand.hbm [shape: f32[75,512], index: 0, kind: input, shape index: {}]   ;;  %s1443_s1 = inlined_call_operand.hbm [shape: f32[1,8,512], index: 1, kind: output, shape index: {}]  }
   0x1   :  { %8 = vsyncpa [#allocation4 + $0x1], 0 }
   0x2   :  { %9 = vsyncpa [#allocation5], 0  ;;  %s895_s6 = smov 0   ;;  %s897_s7 = smov 0  }
   0x3   :  { %s899_s8 = smov 0   ;;  %s901_s9 = smov 0  }
   0x4   :  { %s903_s10 = smov 0   ;;  %s905_s11 = smov 0  }
   0x5 LB: > { %s610_s12 = sadd.s32 4294967295, %s878_s11   ;;  %s24_s13 = sadd.s32 1, %s874_s10  ;;  %s878_s11 = sphi %s905_s11, %s15_s11   ;;  %s874_s10 = sphi %s903_s10, %s1518_s10   ;;  %s870_s9 = sphi %s901_s9, %s1517_s9   ;;  %s866_s8 = sphi %s899_s8, %s1516_s8   ;;  %s862_s7 = sphi %s897_s7, %s1515_s7   ;;  %s858_s6 = sphi %s895_s6, %s1514_s6  }
   0x6   : > { %p25_p0 = scmp.ge.s32.totalorder %s24_s13, 3  ;;  %s38_s14 = sadd.s32 1, %s866_s8 }
   0x7   : > { %p45_p1 = scmp.ne.s32.totalorder %s866_s8, %s862_s7  ;;  %p46_p2 = scmp.eq.s32.totalorder %s878_s11, 0 }
   0x8   : > { %s1520_s13 = smov (%p25_p0, %s24_s13), 0  ;;  %p51_p4 = scmp.ne.s32.totalorder %s862_s7, %s858_s6 }
   0x9   : > { %p47_p3 = por %p46_p2, %p45_p1  ;;  %s35_s15 = ssub.s32 %s874_s10, %s1520_s13 }
   0xa   : > { %p52_p5 = scmp.eq.s32.totalorder %s610_s12, 0  ;;  %p36_p6 = scmp.eq.s32.totalorder %s35_s15, 0 }
   0xb   : > { %p612_p8 = scmp.ge.s32.totalorder %s878_s11, 3 }
   0xc   : > { %p936_p7 = por %p52_p5, %p51_p4 }
   0xd   : > { %s941_s17 = scalar_select %p36_p6, %s866_s8, %s38_s14  }
   0xe   : > { %97 = sbr.rel (%p612_p8) target bundleno = 55 (0x37), region = 16 }
  0x13   : > { %100 = sbr.rel (!%p47_p3) target bundleno = 55 (0x37), region = 20  ;;  %s101_s18 = sand.u32 (%p47_p3), 1, %s866_s8  }
  0x14   : > { %s614_s19 = sshll.u32 (%p47_p3), %s874_s10, 2  ;;  %s613_s20 = sshll.u32 (%p47_p3), %s101_s18, 7 }
  0x15   : > { %s109_s21 = ssub.s32 (%p47_p3), 10, %s614_s19  ;;  %s949_s25 = scalar_lea.sflag (%p47_p3), [#allocation4], %s101_s18 }
  0x16   : > { %p110_p9 = scmp.lt.s32.totalorder (%p47_p3), %s109_s21, 4  ;;  %s105_s26 = scalar_lea.vmem (%p47_p3), [#allocation3], %s613_s20 }
  0x18   : > { %s1522_s21 = smov (!%p110_p9, %s109_s21), 4 }
  0x19   : > { %s631_s22 = sshll.u32 %s1522_s21, 5 }
  0x1a   : > { %s114_s23 = ssub.s32 128, %s631_s22 }
  0x1b   : > { %s115_s24 = sshll.u32 %s114_s23, 4 }
  0x1c   : > { %116 = vsyncadd %s949_s25, %s115_s24  ;;  %p952_p10 = scmp.ne.s32.totalorder %s631_s22, 0  ;;  %s633_s28 = sshll.u32 %s874_s10, 7 }
  0x1d   : > { %s120_s2 = scalar_lea.hbm %s1442_s0, %s633_s28  ;;  %s960_s3 = sshll.u32 %s105_s26, 4  ;;  %s125_s3 = int_to_ptr.vmem [resolvable:$true] %s960_s3 }
  0x1e   : > { %s122_s4 = sshll.u32 %s120_s2, 4  ;;  %s621_s5 = sshll.u32 %s1522_s21, 9  ;;  %s963_s4 = int_to_ptr.hbm [resolvable:$true] %s122_s4 }
  0x1f   : > { %s757_s6 = sshra.s32 %s963_s4, 4  ;;  %s759_s14 = sshrl.u32 %s621_s5, 4  ;;  %s758_s6 = int_to_ptr.hbm [resolvable:$true] %s757_s6 }
  0x20   : > { %s764_s15 = scalar_lea.hbm %s758_s6, %s759_s14  ;;  %s768_s20 = scalar_lea.hbm %s1442_s0, 320 }
  0x21   : > { %p765_p11 = scmp.ne.s32.totalorder %s758_s6, %s764_s15  ;;  %p770_p0 = scmp.lt.s32.totalorder %s768_s20, %s764_s15 }
  0x23   : > { %p766_p12 = pnand %p765_p11, %p952_p10 }
  0x25   : > { %p767_p13 = pneg %p766_p12 }
  0x27   : > { %p772_p1 = pnand %p770_p0, %p767_p13 }
  0x29   : > { %775 = shalt.err (!%p772_p1)
}
  0x2a   : > { %s776_s22 = sshra.s32 %s125_s3, 4  ;;  %s880_s24 = smov [#allocation3]   ;;  %s777_s22 = int_to_ptr.vmem [resolvable:$true] %s776_s22 }
  0x2b   : > { %s783_s23 = scalar_lea.vmem %s777_s22, %s759_s14  ;;  %s787_s26 = scalar_lea.vmem %s880_s24, 256 }
  0x2c   : > { %p784_p2 = scmp.ne.s32.totalorder %s777_s22, %s783_s23  ;;  %p789_p5 = scmp.lt.s32.totalorder %s787_s26, %s783_s23 }
  0x2e   : > { %p785_p3 = pnand %p784_p2, %p952_p10 }
  0x30   : > { %p786_p4 = pneg %p785_p3 }
  0x32   : > { %p791_p6 = pnand %p789_p5, %p786_p4 }
  0x34   : > { %794 = shalt.err (!%p791_p6)
}
  0x35   : > { %s881_s28 = smov 512   ;;  %s882_s29 = smov 32  }
  0x36   : > { %130 = dma.hbm_to_vmem [thread:$0]  (%p952_p10), %s963_s4, %s621_s5, %s125_s3, %s949_s25, %s881_s28, %s881_s28, %s882_s29  }
  0x37 PF: > { %p622_p8 = scmp.ge.s32.totalorder %s878_s11, 1  ;;  %p132_p9 = scmp.lt.s32.totalorder %s878_s11, 4 }
  0x39   : > { %p133_p11 = pnand %p622_p8, %p132_p9 }
  0x3b   : > { %136 = sbr.rel (%p133_p11) target bundleno = 186 (0xba), region = 24 }
  0x40   : > { %s138_s30 = sand.u32 1, %s862_s7  }
  0x41   : > { %s623_s2 = sshll.u32 %s138_s30, 7  ;;  %s139_s6 = scalar_lea.sflag [#allocation4], %s138_s30 }
  0x42   : > { %s989_s14 = scalar_lea.vmem [#allocation3], %s623_s2 }
  0x43   : > { %849 = dma.done.wait (%p936_p7), %s139_s6, 2048  }
  0x44   : > { %851 = vsyncadd (%p936_p7), %s139_s6, 4294965248  ;;  %p624_p10 = scmp.ne.s32.totalorder %s870_s9, 0 }
  0x46   : > { %168 = sbr.rel (%p624_p10) target bundleno = 80 (0x50), region = 32 }
  0x4b   : > { %v883_v0 = vmov 0.0  }
  0x4c   : > { %169 = vst [vmem:[#allocation2 + $0x10] sm:$0xff] %v883_v0 }
  0x4d   : > { %170 = vst [vmem:[#allocation2] sm:$0xff] %v883_v0 }
  0x4e   : > { %171 = vst [vmem:[#allocation2 + $0x18] sm:$0xff] %v883_v0 }
  0x4f   : > { %172 = vst [vmem:[#allocation2 + $0x8] sm:$0xff] %v883_v0 }
  0x50 PF: > { %v997_v1 = vld [vmem:[%s989_s14] sm:$0xff]  ;;  %v1000_v2 = vld [vmem:[%s989_s14 + $0x8] sm:$0xff]  ;;  %v1003_v3 = vld [vmem:[%s989_s14 + $0x10] sm:$0xff]  ;;  %s625_s16 = sshll.u32 %s870_s9, 5  ;;  %p626_p7 = scmp.ne.s32.totalorder %s870_s9, 2 }
  0x51   : > { %v1006_v4 = vld [vmem:[%s989_s14 + $0x18] sm:$0xff]  ;;  %v1009_v5 = vld [vmem:[%s989_s14 + $0x20] sm:$0xff]  ;;  %v1012_v6 = vld [vmem:[%s989_s14 + $0x28] sm:$0xff]  ;;  %v205_v10 = vand.u32 2147483647, %v997_v1 }
  0x52   : > { %v206_v11 = vand.u32 2147483647, %v1000_v2  ;;  %v1020_v12 = vld [vmem:[%s989_s14 + $0x30] sm:$0xff]  ;;  %v1023_v13 = vld [vmem:[%s989_s14 + $0x38] sm:$0xff]  ;;  %v207_v14 = vand.u32 2147483647, %v1003_v3 }
  0x53   : > { %v208_v15 = vand.u32 2147483647, %v1006_v4  ;;  %v1028_v16 = vld [vmem:[%s989_s14 + $0x40] sm:$0xff]  ;;  %v209_v20 = vand.u32 2147483647, %v1009_v5  ;;  %v1035_v21 = vld [vmem:[%s989_s14 + $0x48] sm:$0xff] }
  0x54   : > { %v1038_v22 = vld [vmem:[%s989_s14 + $0x50] sm:$0xff]  ;;  %v1041_v23 = vld [vmem:[%s989_s14 + $0x58] sm:$0xff]  ;;  %v210_v25 = vand.u32 2147483647, %v1012_v6  ;;  %v1046_v26 = vld [vmem:[%s989_s14 + $0x60] sm:$0xff]  ;;  %v221_v29 = vsub.f32 0.0, %v205_v10 }
  0x55   : > { %1451 = vst [vmem:[#allocation9_spill] sm:$0xff] %v1046_v26  ;;  %v211_v28 = vand.u32 2147483647, %v1020_v12  ;;  %v222_v30 = vsub.f32 0.0, %v206_v11  ;;  %v212_v31 = vand.u32 2147483647, %v1023_v13 }
  0x56   : > { %v213_v32 = vand.u32 2147483647, %v1028_v16  ;;  %v223_v33 = vsub.f32 0.0, %v207_v14  ;;  %v224_v34 = vsub.f32 0.0, %v208_v15  ;;  %v214_v36 = vand.u32 2147483647, %v1035_v21 }
  0x57   : > { %v215_v37 = vand.u32 2147483647, %v1038_v22  ;;  %v225_v38 = vsub.f32 0.0, %v209_v20  ;;  %v1056_v39 = vld [vmem:[%s989_s14 + $0x68] sm:$0xff]  ;;  %v216_v40 = vand.u32 2147483647, %v1041_v23 }
  0x58   : > { %1452 = vst [vmem:[#allocation10_spill] sm:$0xff] %v1056_v39  ;;  %v217_v41 = vand.u32 2147483647, %v1046_v26  ;;  %v226_v42 = vsub.f32 0.0, %v210_v25  ;;  %v1061_v43 = vld [vmem:[%s989_s14 + $0x70] sm:$0xff]  ;;  %v227_v44 = vsub.f32 0.0, %v211_v28 }
  0x59   : > { %1453 = vst [vmem:[#allocation11_spill] sm:$0xff] %v1061_v43  ;;  %v237_v45 = vmul.f32 1.442695, %v221_v29  ;;  %v239_v46 = vmul.f32 1.442695, %v222_v30  ;;  %v1064_v47 = vld [vmem:[%s989_s14 + $0x78] sm:$0xff] }
  0x5a   : > { %1454 = vst [vmem:[#allocation12_spill] sm:$0xff] %v1064_v47  ;;  %v228_v48 = vsub.f32 0.0, %v212_v31  ;;  %v241_v49 = vmul.f32 1.442695, %v223_v33  ;;  %v243_v50 = vmul.f32 1.442695, %v224_v34  ;;  %v1444_v33 = vlaneseq }
  0x5b   : > { %v218_v51 = vand.u32 2147483647, %v1056_v39  ;;  %v229_v52 = vsub.f32 0.0, %v213_v32  ;;  %693 = vpow2.f32 %v237_v45  ;;  %v245_v53 = vmul.f32 1.442695, %v225_v38 }
  0x5c   : > { %v219_v54 = vand.u32 2147483647, %v1061_v43  ;;  %v230_v55 = vsub.f32 0.0, %v214_v36  ;;  %695 = vpow2.f32 %v239_v46  ;;  %v247_v56 = vmul.f32 1.442695, %v226_v42 }
  0x5d   : > { %v220_v57 = vand.u32 2147483647, %v1064_v47  ;;  %v231_v58 = vsub.f32 0.0, %v215_v37  ;;  %697 = vpow2.f32 %v241_v49  ;;  %v249_v59 = vmul.f32 1.442695, %v227_v44 }
  0x5e   : > { %v232_v61 = vsub.f32 0.0, %v216_v40  ;;  %699 = vpow2.f32 %v243_v50  ;;  %v251_v62 = vmul.f32 1.442695, %v228_v48  ;;  %v233_v0 = vsub.f32 0.0, %v217_v41 }
  0x5f   : > { %701 = vpow2.f32 %v245_v53  ;;  %v253_v10 = vmul.f32 1.442695, %v229_v52  ;;  %v234_v14 = vsub.f32 0.0, %v218_v51  ;;  %v255_v15 = vmul.f32 1.442695, %v230_v55 }
  0x60   : > { %703 = vpow2.f32 %v247_v56  ;;  %v235_v25 = vsub.f32 0.0, %v219_v54  ;;  %v236_v28 = vsub.f32 0.0, %v220_v57  ;;  %v257_v29 = vmul.f32 1.442695, %v231_v58 }
  0x61   : > { %v694_v20 = vpop.eup %693  ;;  %705 = vpow2.f32 %v249_v59  ;;  %v259_v31 = vmul.f32 1.442695, %v232_v61  ;;  %v261_v38 = vmul.f32 1.442695, %v233_v0  ;;  %v263_v42 = vmul.f32 1.442695, %v234_v14 }
  0x62   : > { %v696_v30 = vpop.eup %695  ;;  %707 = vpow2.f32 %v251_v62  ;;  %v272_v32 = vmul.f32 -0.5, %v694_v20  ;;  %v265_v46 = vmul.f32 1.442695, %v235_v25  ;;  %v267_v52 = vmul.f32 1.442695, %v236_v28 }
  0x63   : > { %v1072_v34 = vpop.eup %697  ;;  %709 = vpow2.f32 %v253_v10  ;;  %v281_v44 = vmul.f32 -0.5, %v696_v30  ;;  %v1084_v53 = vshrl.u32 %v1444_v33, 7  ;;  %v269_v55 = vadd.f32 1.0, %v694_v20 }
  0x64   : > { %v700_v40 = vpop.eup %699  ;;  %711 = vpow2.f32 %v255_v15  ;;  %v273_v48 = vadd.f32 1.0, %v272_v32  ;;  %v290_v49 = vmul.f32 -0.5, %v1072_v34  ;;  %v275_v56 = vand.u32 2147483647, %v694_v20 }
  0x65   : > { %v1077_v45 = vpop.eup %701  ;;  %713 = vpow2.f32 %v257_v29  ;;  %v299_v57 = vmul.f32 -0.5, %v700_v40  ;;  %v278_v59 = vadd.f32 1.0, %v696_v30  ;;  %v282_v61 = vadd.f32 1.0, %v281_v44 }
  0x66   : > { %v1080_v50 = vpop.eup %703  ;;  %715 = vpow2.f32 %v259_v31  ;;  %v284_v62 = vand.u32 2147483647, %v696_v30  ;;  %v1092_v10 = vmul.f32 %v694_v20, %v273_v48  ;;  %v287_v14 = vadd.f32 1.0, %v1072_v34 }
  0x67   : > { %v1086_v54 = vpop.eup %705  ;;  %717 = vpow2.f32 %v261_v38  ;;  %v291_v15 = vadd.f32 1.0, %v290_v49  ;;  %v293_v28 = vand.u32 2147483647, %v1072_v34  ;;  %v296_v29 = vadd.f32 1.0, %v700_v40 }
  0x68   : > { %v1088_v58 = vpop.eup %707  ;;  %719 = vpow2.f32 %v263_v42  ;;  %v308_v31 = vmul.f32 -0.5, %v1077_v45  ;;  %v300_v38 = vadd.f32 1.0, %v299_v57  ;;  %v302_v42 = vand.u32 2147483647, %v700_v40 }
  0x69   : > { %v1090_v0 = vpop.eup %709  ;;  %721 = vpow2.f32 %v265_v46  ;;  %v305_v44 = vadd.f32 1.0, %v1077_v45  ;;  %vm1104_vm0 = vcmp.lt.f32.partialorder %v275_v56, 0.0004427343  ;;  %v1108_v48 = vmul.f32 %v696_v30, %v282_v61 }
  0x6a   : > { %v1095_v25 = vpop.eup %711  ;;  %723 = vpow2.f32 %v267_v52  ;;  %v314_v49 = vadd.f32 1.0, %v1080_v50  ;;  %v317_v52 = vmul.f32 -0.5, %v1080_v50  ;;  %vm1114_vm1 = vcmp.lt.f32.partialorder %v284_v62, 0.0004427343 }
  0x6b   : > { %v1099_v32 = vpop.eup %713  ;;  %725 = vlog2.f32 %v269_v55  ;;  %v1119_v57 = vmul.f32 %v1072_v34, %v291_v15  ;;  %v323_v56 = vadd.f32 1.0, %v1086_v54  ;;  %v309_v61 = vadd.f32 1.0, %v308_v31 }
  0x6c   : > { %v1102_v20 = vpop.eup %715  ;;  %727 = vlog2.f32 %v278_v59  ;;  %v326_v59 = vmul.f32 -0.5, %v1086_v54  ;;  %v311_v41 = vand.u32 2147483647, %v1077_v45  ;;  %v332_v37 = vadd.f32 1.0, %v1088_v58 }
  0x6d   : > { %v1112_v51 = vpop.eup %717  ;;  %729 = vlog2.f32 %v287_v14  ;;  %vm1129_vm2 = vcmp.lt.f32.partialorder %v293_v28, 0.0004427343  ;;  %v1133_v34 = vmul.f32 %v700_v40, %v300_v38  ;;  %vm1135_vm3 = vcmp.lt.f32.partialorder %v302_v42, 0.0004427343 }
  0x6e   : > { %v1123_v30 = vpop.eup %719  ;;  %731 = vlog2.f32 %v296_v29  ;;  %v320_v15 = vand.u32 2147483647, %v1080_v50  ;;  %v335_v29 = vmul.f32 -0.5, %v1088_v58  ;;  %v318_v11 = vadd.f32 1.0, %v317_v52 }
  0x6f   : > { %v1127_v62 = vpop.eup %721  ;;  %733 = vlog2.f32 %v305_v44  ;;  %v329_v28 = vand.u32 2147483647, %v1086_v54  ;;  %v341_v63 = vadd.f32 1.0, %v1090_v0  ;;  %v327_v40 = vadd.f32 1.0, %v326_v59 }
  0x70   : > { %v1141_v31 = vpop.eup %723  ;;  %735 = vlog2.f32 %v314_v49  ;;  %v338_v38 = vand.u32 2147483647, %v1088_v58  ;;  %v344_v42 = vmul.f32 -0.5, %v1090_v0  ;;  %v1148_v33 = vmul.f32 %v1077_v45, %v309_v61 }
  0x71   : > { %v726_v60 = vpop.eup %725  ;;  %737 = vlog2.f32 %v323_v56  ;;  %vm1150_vm4 = vcmp.lt.f32.partialorder %v311_v41, 0.0004427343  ;;  %v336_v49 = vadd.f32 1.0, %v335_v29  ;;  %vm1156_vm5 = vcmp.lt.f32.partialorder %v320_v15, 0.0004427343 }
  0x72   : > { %v728_v44 = vpop.eup %727  ;;  %739 = vlog2.f32 %v332_v37  ;;  %v1154_v27 = vmul.f32 0.6931472, %v726_v60  ;;  %v347_v59 = vand.u32 2147483647, %v1090_v0  ;;  %v1164_v41 = vmul.f32 %v1080_v50, %v318_v11 }
  0x73   : > { %v730_v52 = vpop.eup %729  ;;  %741 = vlog2.f32 %v341_v63  ;;  %v1161_v19 = vmul.f32 0.6931472, %v728_v44  ;;  %vm1166_vm6 = vcmp.lt.f32.partialorder %v329_v28, 0.0004427343  ;;  %v350_v60 = vadd.f32 1.0, %v1095_v25 }
  0x74   : > { %v732_v24 = vpop.eup %731  ;;  %v1172_v61 = vmul.f32 %v1086_v54, %v327_v40  ;;  %vm1174_vm7 = vcmp.lt.f32.partialorder %v338_v38, 0.0004427343  ;;  %v345_v15 = vadd.f32 1.0, %v344_v42  ;;  %v353_v29 = vmul.f32 -0.5, %v1095_v25 }
  0x75   : > { %v734_v37 = vpop.eup %733  ;;  %v1179_v11 = vmul.f32 0.6931472, %v730_v52  ;;  %v1181_v50 = vmul.f32 0.6931472, %v732_v24  ;;  %v1186_v18 = vmul.f32 %v1088_v58, %v336_v49  ;;  %vm1192_vm8 = vcmp.lt.f32.partialorder %v347_v59, 0.0004427343 }
  0x76   : > { %v736_v44 = vpop.eup %735  ;;  %v1183_v28 = vmul.f32 0.6931472, %v734_v37  ;;  %743 = vlog2.f32 %v350_v60  ;;  %v359_v38 = vadd.f32 1.0, %v1099_v32  ;;  %v356_v49 = vand.u32 2147483647, %v1095_v25 }
  0x77   : > { %v738_v17 = vpop.eup %737  ;;  %v1201_v42 = vmul.f32 0.6931472, %v736_v44  ;;  %v362_v52 = vmul.f32 -0.5, %v1099_v32  ;;  %v1208_v9 = vmul.f32 %v1090_v0, %v345_v15  ;;  %v354_v60 = vadd.f32 1.0, %v353_v29 }
  0x78   : > { %v740_v24 = vpop.eup %739  ;;  %v1205_v59 = vmul.f32 0.6931472, %v738_v17  ;;  %745 = vlog2.f32 %v359_v38  ;;  %v368_v29 = vadd.f32 1.0, %v1102_v20  ;;  %v371_v38 = vmul.f32 -0.5, %v1102_v20 }
  0x79   : > { %v742_v37 = vpop.eup %741  ;;  %v1222_v58 = vmul.f32 0.6931472, %v740_v24  ;;  %v363_v15 = vadd.f32 1.0, %v362_v52  ;;  %vm1232_vm9 = vcmp.lt.f32.partialorder %v356_v49, 0.0004427343  ;;  %v377_v24 = vadd.f32 1.0, %v1112_v51 }
  0x7a   : > { %v1224_v0 = vmul.f32 0.6931472, %v742_v37  ;;  %v365_v17 = vand.u32 2147483647, %v1099_v32  ;;  %v331_v52 = vsel %vm1166_vm6, %v1172_v61, %v1205_v59  ;;  %v1243_v54 = vmul.f32 %v1095_v25, %v354_v60 }
  0x7b   : > { %747 = vlog2.f32 %v368_v29  ;;  %v372_v7 = vadd.f32 1.0, %v371_v38  ;;  %v340_v49 = vsel %vm1174_vm7, %v1186_v18, %v1222_v58  ;;  %v380_v8 = vmul.f32 -0.5, %v1112_v51 }
  0x7c   : > { %v744_v37 = vpop.eup %743  ;;  %749 = vlog2.f32 %v377_v24  ;;  %v386_v47 = vadd.f32 1.0, %v1123_v30  ;;  %v349_v45 = vsel %vm1192_vm8, %v1208_v9, %v1224_v0  ;;  %v1256_v25 = vmul.f32 %v1099_v32, %v363_v15 }
  0x7d   : > { %v374_v61 = vand.u32 2147483647, %v1102_v20  ;;  %v389_v59 = vmul.f32 -0.5, %v1123_v30  ;;  %v352_v63 = vmul.f32 0.6931472, %v744_v37  ;;  %v1266_v60 = vmul.f32 %v1102_v20, %v372_v7 }
  0x7e   : > { %v746_v43 = vpop.eup %745  ;;  %vm1260_vm10 = vcmp.lt.f32.partialorder %v365_v17, 0.0004427343  ;;  %v383_v58 = vand.u32 2147483647, %v1112_v51  ;;  %751 = vlog2.f32 %v386_v47  ;;  %v381_v40 = vadd.f32 1.0, %v380_v8 }
  0x7f   : > { %v395_v9 = vadd.f32 1.0, %v1127_v62  ;;  %v398_v32 = vmul.f32 -0.5, %v1127_v62  ;;  %v1270_v0 = vmul.f32 0.6931472, %v746_v43  ;;  %v390_v15 = vadd.f32 1.0, %v389_v59 }
  0x80   : > { %v392_v29 = vand.u32 2147483647, %v1123_v30  ;;  %v404_v17 = vadd.f32 1.0, %v1141_v31  ;;  %v401_v47 = vand.u32 2147483647, %v1127_v62  ;;  %v407_v7 = vmul.f32 -0.5, %v1141_v31 }
  0x81   : > { %v748_v38 = vpop.eup %747  ;;  %753 = vlog2.f32 %v395_v9  ;;  %v399_v24 = vadd.f32 1.0, %v398_v32  ;;  %vm1276_vm11 = vcmp.lt.f32.partialorder %v374_v61, 0.0004427343  ;;  %v410_v43 = vand.u32 2147483647, %v1141_v31 }
  0x82   : > { %v750_v20 = vpop.eup %749  ;;  %v370_v8 = vmul.f32 0.6931472, %v748_v38  ;;  %755 = vlog2.f32 %v404_v17  ;;  %v358_v59 = vsel %vm1232_vm9, %v1243_v54, %v352_v63  ;;  %v382_v9 = vmul.f32 %v1112_v51, %v381_v40  ;;  %v1510_v40 = vld [vmem:[#allocation11_spill] sm:$0xff] }
  0x83   : > { %v379_v39 = vmul.f32 0.6931472, %v750_v20  ;;  %v408_v32 = vadd.f32 1.0, %v407_v7  ;;  %v367_v61 = vsel %vm1260_vm10, %v1256_v25, %v1270_v0  ;;  %vm1289_vm12 = vcmp.lt.f32.partialorder %v383_v58, 0.0004427343 }
  0x84   : > { %v752_v26 = vpop.eup %751  ;;  %v391_v17 = vmul.f32 %v1123_v30, %v390_v15  ;;  %vm1294_vm13 = vcmp.lt.f32.partialorder %v392_v29, 0.0004427343  ;;  %v376_v51 = vsel %vm1276_vm11, %v1266_v60, %v370_v8  ;;  %v400_v54 = vmul.f32 %v1127_v62, %v399_v24 }
  0x85   : > { %vm1302_vm14 = vcmp.lt.f32.partialorder %v401_v47, 0.0004427343  ;;  %v1485_v25 = vmax.f32 %v997_v1, 0.0  ;;  %v1486_v30 = vsel %vm1104_vm0, %v1092_v10, %v1154_v27  ;;  %v388_v58 = vmul.f32 0.6931472, %v752_v26 }
  0x86   : > { %vm1315_vm15 = vcmp.lt.f32.partialorder %v410_v43, 0.0004427343  ;;  %v1489_v62 = vmax.f32 %v1000_v2, 0.0  ;;  %v1490_v60 = vsel %vm1114_vm1, %v1108_v48, %v1161_v19  ;;  %v1491_v46 = vmax.f32 %v1003_v3, 0.0 }
  0x87   : > { %v1313_v18 = vadd.f32 %v1486_v30, %v1485_v25  ;;  %v1492_v26 = vsel %vm1129_vm2, %v1119_v57, %v1179_v11  ;;  %v754_v10 = vpop.eup %753  ;;  %v385_v2 = vsel %vm1289_vm12, %v382_v9, %v379_v39  ;;  %v409_v55 = vmul.f32 %v1141_v31, %v408_v32  ;;  %v1508_v25 = vld [vmem:[#allocation10_spill] sm:$0xff] }
  0x88   : > { %v1326_v1 = vadd.f32 %v1490_v60, %v1489_v62  ;;  %v1335_v27 = vadd.f32 %v1492_v26, %v1491_v46  ;;  %v1493_v0 = vmax.f32 %v1006_v4, 0.0  ;;  %v1494_v3 = vsel %vm1135_vm3, %v1133_v34, %v1181_v50  ;;  %v756_v39 = vpop.eup %755  ;;  %v1512_v46 = vld [vmem:[#allocation12_spill] sm:$0xff] }
  0x89   : > { %v1495_v36 = vmax.f32 %v1009_v5, 0.0  ;;  %v1496_v48 = vsel %vm1150_vm4, %v1148_v33, %v1183_v28  ;;  %v397_v31 = vmul.f32 0.6931472, %v754_v10  ;;  %v1497_v4 = vmax.f32 %v1012_v6, 0.0 }
  0x8a   : > { %v1347_v19 = vadd.f32 %v1494_v3, %v1493_v0  ;;  %v1498_v34 = vsel %vm1156_vm5, %v1164_v41, %v1201_v42  ;;  %v1499_v5 = vmax.f32 %v1020_v12, 0.0  ;;  %v1500_v33 = vmax.f32 %v1023_v13, 0.0 }
  0x8b   : > { %v1356_v57 = vadd.f32 %v1496_v48, %v1495_v36  ;;  %v1366_v14 = vadd.f32 %v1498_v34, %v1497_v4  ;;  %v406_v50 = vmul.f32 0.6931472, %v756_v39  ;;  %v434_v28 = vadd.s32 8, %v1084_v53 }
  0x8c   : > { %v1370_v35 = vadd.f32 %v331_v52, %v1499_v5  ;;  %v1374_v11 = vadd.f32 %v340_v49, %v1500_v33  ;;  %v435_v6 = vadd.s32 16, %v1084_v53  ;;  %v436_v56 = vadd.s32 24, %v1084_v53 }
  0x8d   : > { %v394_v41 = vsel %vm1294_vm13, %v391_v17, %v388_v58  ;;  %v1501_v42 = vmax.f32 %v1028_v16, 0.0  ;;  %v437_v12 = vstv %s625_s16  ;;  %v1502_v52 = vlaneseq }
  0x8e   : > { %v403_v13 = vsel %vm1302_vm14, %v400_v54, %v397_v31  ;;  %v1503_v49 = vmax.f32 %v1035_v21, 0.0  ;;  %v438_v47 = vadd.s32 %v437_v12, %v1084_v53  ;;  %v439_v7 = vadd.s32 %v437_v12, %v434_v28 }
  0x8f   : > { %v1383_v15 = vadd.f32 %v349_v45, %v1501_v42  ;;  %v447_v29 = vand.u32 127, %v1502_v52  ;;  %v412_v20 = vsel %vm1315_vm15, %v409_v55, %v406_v50  ;;  %v440_v8 = vadd.s32 %v437_v12, %v435_v6 }
  0x90   : > { %v422_v24 = vadd.f32 %v358_v59, %v1503_v49  ;;  %v441_v37 = vadd.s32 %v437_v12, %v436_v56  ;;  %v442_v45 = vmul.u32 512, %v438_v47  ;;  %v443_v43 = vmul.u32 512, %v439_v7  ;;  %v1506_v59 = vld [vmem:[#allocation9_spill] sm:$0xff] }
  0x91   : > { %v448_v16 = vadd.s32 128, %v447_v29  ;;  %v449_v9 = vadd.s32 256, %v447_v29  ;;  %v450_v32 = vadd.s32 384, %v447_v29  ;;  %v1504_v38 = vmax.f32 %v1038_v22, 0.0 }
  0x92   : > { %v1505_v44 = vmax.f32 %v1041_v23, 0.0  ;;  %v1507_v54 = vmax.f32 %v1506_v59, 0.0  ;;  %v444_v63 = vmul.u32 512, %v440_v8  ;;  %v1509_v30 = vmax.f32 %v1508_v25, 0.0 }
  0x93   : > { %v423_v17 = vadd.f32 %v367_v61, %v1504_v38  ;;  %v1511_v62 = vmax.f32 %v1510_v40, 0.0  ;;  %v1513_v26 = vmax.f32 %v1512_v46, 0.0  ;;  %v445_v55 = vmul.u32 512, %v441_v37 }
  0x94   : > { %v424_v21 = vadd.f32 %v376_v51, %v1505_v44  ;;  %v425_v53 = vadd.f32 %v385_v2, %v1507_v54  ;;  %v426_v58 = vadd.f32 %v394_v41, %v1509_v30  ;;  %v451_v0 = vadd.s32 %v447_v29, %v442_v45 }
  0x95   : > { %v427_v60 = vadd.f32 %v403_v13, %v1511_v62  ;;  %v428_v10 = vadd.f32 %v412_v20, %v1513_v26  ;;  %v452_v22 = vadd.s32 %v448_v16, %v442_v45  ;;  %v453_v61 = vadd.s32 %v449_v9, %v442_v45 }
  0x96   : > { %v454_v3 = vadd.s32 %v450_v32, %v442_v45  ;;  %v455_v23 = vadd.s32 %v447_v29, %v443_v43  ;;  %v456_v51 = vadd.s32 %v448_v16, %v443_v43  ;;  %v457_v36 = vadd.s32 %v449_v9, %v443_v43  ;;  %v499_v45 = vld [vmem:[#allocation2 + $0x10] sm:$0xff] }
  0x97   : > { %v458_v48 = vadd.s32 %v450_v32, %v443_v43  ;;  %v459_v2 = vadd.s32 %v447_v29, %v444_v63  ;;  %v460_v39 = vadd.s32 %v448_v16, %v444_v63  ;;  %v461_v31 = vadd.s32 %v449_v9, %v444_v63  ;;  %v501_v43 = vld [vmem:[#allocation2 + $0x18] sm:$0xff] }
  0x98   : > { %v462_v4 = vadd.s32 %v450_v32, %v444_v63  ;;  %v463_v34 = vadd.s32 %v447_v29, %v445_v55  ;;  %v464_v5 = vadd.s32 %v448_v16, %v445_v55  ;;  %v465_v33 = vadd.s32 %v449_v9, %v445_v55 }
  0x99   : > { %v466_v50 = vadd.s32 %v450_v32, %v445_v55  ;;  %vm467_vm0 = vcmp.lt.s32.totalorder %v451_v0, 38100  ;;  %vm468_vm1 = vcmp.lt.s32.totalorder %v452_v22, 38100  ;;  %vm469_vm2 = vcmp.lt.s32.totalorder %v453_v61, 38100 }
  0x9a   : > { %vm470_vm3 = vcmp.lt.s32.totalorder %v454_v3, 38100  ;;  %vm471_vm4 = vcmp.lt.s32.totalorder %v455_v23, 38100  ;;  %vm472_vm5 = vcmp.lt.s32.totalorder %v456_v51, 38100  ;;  %vm473_vm6 = vcmp.lt.s32.totalorder %v457_v36, 38100 }
  0x9b   : > { %vm474_vm7 = vcmp.lt.s32.totalorder %v458_v48, 38100  ;;  %vm475_vm8 = vcmp.lt.s32.totalorder %v459_v2, 38100  ;;  %vm476_vm9 = vcmp.lt.s32.totalorder %v460_v39, 38100  ;;  %vm477_vm10 = vcmp.lt.s32.totalorder %v461_v31, 38100 }
  0x9c   : > { %vm478_vm11 = vcmp.lt.s32.totalorder %v462_v4, 38100  ;;  %v483_v28 = vsel %vm467_vm0, %v1313_v18, 0.0  ;;  %v484_v6 = vsel %vm468_vm1, %v1326_v1, 0.0  ;;  %v485_v56 = vsel %vm469_vm2, %v1335_v27, 0.0 }
  0x9d   : > { %v486_v41 = vsel %vm470_vm3, %v1347_v19, 0.0  ;;  %v487_v42 = vsel %vm471_vm4, %v1356_v57, 0.0  ;;  %v488_v12 = vsel %vm472_vm5, %v1366_v14, 0.0  ;;  %v489_v52 = vsel %vm473_vm6, %v1370_v35, 0.0 }
  0x9e   : > { %v490_v29 = vsel %vm474_vm7, %v1374_v11, 0.0  ;;  %vm479_vm12 = vcmp.lt.s32.totalorder %v463_v34, 38100  ;;  %vm480_vm13 = vcmp.lt.s32.totalorder %v464_v5, 38100  ;;  %vm481_vm14 = vcmp.lt.s32.totalorder %v465_v33, 38100 }
  0x9f   : > { %vm482_vm15 = vcmp.lt.s32.totalorder %v466_v50, 38100  ;;  %v491_v18 = vsel %vm475_vm8, %v1383_v15, 0.0  ;;  %v492_v1 = vsel %vm476_vm9, %v422_v24, 0.0  ;;  %v493_v27 = vsel %vm477_vm10, %v423_v17, 0.0  ;;  %v500_v15 = vld [vmem:[#allocation2] sm:$0xff]  ;;  %v502_v24 = vld [vmem:[#allocation2 + $0x8] sm:$0xff] }
  0xa0   : > { %v494_v19 = vsel %vm478_vm11, %v424_v21, 0.0  ;;  %v503_v57 = vadd.f32 %v487_v42, %v483_v28  ;;  %v506_v13 = vadd.f32 %v488_v12, %v484_v6  ;;  %v509_v14 = vadd.f32 %v489_v52, %v485_v56 }
  0xa1   : > { %v512_v49 = vadd.f32 %v490_v29, %v486_v41  ;;  %v495_v35 = vsel %vm479_vm12, %v425_v53, 0.0  ;;  %v496_v47 = vsel %vm480_vm13, %v426_v58, 0.0  ;;  %v497_v11 = vsel %vm481_vm14, %v427_v60, 0.0 }
  0xa2   : > { %v498_v7 = vsel %vm482_vm15, %v428_v10, 0.0  ;;  %v504_v20 = vadd.f32 %v503_v57, %v491_v18  ;;  %v507_v8 = vadd.f32 %v506_v13, %v492_v1  ;;  %v510_v37 = vadd.f32 %v509_v14, %v493_v27 }
  0xa3   : > { %v513_v16 = vadd.f32 %v512_v49, %v494_v19 }
  0xa4   : > { %v505_v9 = vadd.f32 %v504_v20, %v495_v35  ;;  %v508_v32 = vadd.f32 %v507_v8, %v496_v47  ;;  %v511_v38 = vadd.f32 %v510_v37, %v497_v11 }
  0xa5   : > { %v514_v17 = vadd.f32 %v513_v16, %v498_v7 }
  0xa6   : > { %v515_v44 = vadd.f32 %v505_v9, %v499_v45  ;;  %v516_v21 = vadd.f32 %v508_v32, %v500_v15  ;;  %v517_v59 = vadd.f32 %v511_v38, %v501_v43 }
  0xa7   : > { %v518_v54 = vadd.f32 %v514_v17, %v502_v24  ;;  %526 = sbr.rel (%p626_p7) target bundleno = 180 (0xb4), region = 36 }
  0xa8   : > { %519 = vst [vmem:[#allocation2 + $0x10] sm:$0xff] %v515_v44 }
  0xa9   : > { %520 = vst [vmem:[#allocation2] sm:$0xff] %v516_v21 }
  0xaa   : > { %521 = vst [vmem:[#allocation2 + $0x18] sm:$0xff] %v517_v59 }
  0xab   : > { %522 = vst [vmem:[#allocation2 + $0x8] sm:$0xff] %v518_v54 }
  0xaf   : > { %v527_v53 = vld [vmem:[#allocation2 + $0x10] sm:$0xff] }
  0xb0   : > { %v528_v63 = vld [vmem:[#allocation2] sm:$0xff]  ;;  %531 = vst [vmem:[#allocation6] sm:$0xff] %v527_v53 }
  0xb1   : > { %v529_v25 = vld [vmem:[#allocation2 + $0x18] sm:$0xff]  ;;  %532 = vst [vmem:[#allocation6 + $0x8] sm:$0xff] %v528_v63 }
  0xb2   : > { %v530_v30 = vld [vmem:[#allocation2 + $0x8] sm:$0xff]  ;;  %533 = vst [vmem:[#allocation6 + $0x10] sm:$0xff] %v529_v25 }
  0xb3   : > { %534 = vst [vmem:[#allocation6 + $0x18] sm:$0xff] %v530_v30 }
  0xb4 PF: > { %p639_p12 = scmp.eq.s32.totalorder %s610_s12, 2  ;;  %s546_s27 = sshll.u32 %s1443_s1, 4  ;;  %s547_s27 = int_to_ptr.hbm [resolvable:$true] %s546_s27 }
  0xb5   : > { %s884_s3 = smov [#allocation6]  }
  0xb6   : > { %s544_s4 = sshll.u32 %s884_s3, 4  ;;  %s545_s4 = int_to_ptr.vmem [resolvable:$true] %s544_s4 }
  0xb7   : > { %636 = dma.vmem_to_hbm [thread:$0]  (%p639_p12), %s545_s4, 512, %s547_s27, [#allocation5]  }
  0xb8   : > { %853 = dma.done.wait (%p639_p12), [#allocation5], 512  }
  0xb9   : > { %855 = vsyncadd (%p639_p12), [#allocation5], 4294966784 }
  0xba PF: > { %s15_s11 = sadd.s32 1, %s878_s11   ;;  %s1514_s6 = smov %s862_s7 }
  0xbb   : > { %p12_p13 = scmp.ge.s32.totalorder %s15_s11, 5   ;;  %s1515_s7 = smov %s866_s8 }
  0xbc   : > { %s1516_s8 = smov %s941_s17  ;;  %s1517_s9 = smov %s874_s10 }
  0xbd   : > { %s1518_s10 = smov %s1520_s13  ;;  %14 = sbr.rel (!%p12_p13) target bundleno = 5 (0x5), region = 70 }
  0xc2   :  { %560 = vsyncpa [#allocation4], 1 }
  0xc3   :  { %562 = vsyncpa [#allocation4 + $0x1], 1 }
  0xc4   :  { %563 = vsyncpa [#allocation5], 1 }
  0xc5   :  { %565 = vsyncpa [#allocation5 + $0x1], 1 }

</bundles_post_ra>
